<compile_context>
chip_gen: v7x
topology: tpu7x:2x2x1
jax: 0.10.0
libtpu: 0.0.40
codegen_flags: <defaults>
</compile_context>

<pallas_src>
import math

import jax
import jax.numpy as jnp
from jax.experimental import pallas as pl
from jax.experimental.pallas import tpu as pltpu

HIDDEN = 100
PAD = 128            # lane-padded size for hidden / output feature dims
NEG_INF = -1e30      # softmax mask for padded output lanes


def _round_up(v, m):
    return ((v + m - 1) // m) * m


# --------------------------------------------------------------------------- #
# Kernel
# --------------------------------------------------------------------------- #
def _dqn_kernel(x_ref, w_in_ref, w_hid_ref, w_out_ref, b_ref, out_ref):
    """Fused 5-layer MLP + softmax on one (TB, F_in) batch tile.

    x_ref:     (TB, F_in)     f32  VMEM  raw inputs (no lane padding)
    w_in_ref:  (F_in, 128)    bf16 VMEM  layer-1 weight (in, out), zero-padded
    w_hid_ref: (3, 128, 128)  bf16 VMEM  layers 2-4 weights, zero-padded
    w_out_ref: (128, 128)     bf16 VMEM  layer-5 weight, zero-padded
    b_ref:     (8, 128)       f32  VMEM  rows 0..4 = biases; row 4 padded
                                          lanes are -1e30 (softmax mask)
    out_ref:   (TB, 128)      f32  VMEM  softmax probs (padded lanes -> 0)
    """
    # layer 1: bf16 matmul, f32 accumulation, f32 bias + ReLU
    h = jnp.dot(x_ref[...].astype(jnp.bfloat16), w_in_ref[...],
                preferred_element_type=jnp.float32) + b_ref[0:1, :]
    h = jnp.maximum(h, 0.0)

    # layers 2-4 (statically unrolled; w_hid_ref[k] is a static slice)
    for k in range(3):
        h = jnp.dot(h.astype(jnp.bfloat16), w_hid_ref[k],
                    preferred_element_type=jnp.float32) + b_ref[k + 1:k + 2, :]
        h = jnp.maximum(h, 0.0)

    # layer 5 (logits; padded lanes get bias -1e30)
    logits = jnp.dot(h.astype(jnp.bfloat16), w_out_ref[...],
                     preferred_element_type=jnp.float32) + b_ref[4:5, :]

    # softmax over dim=1 (lanes); padded lanes underflow to exactly 0.
    m = jnp.max(logits, axis=1, keepdims=True)
    e = jnp.exp(logits - m)
    denom = jnp.sum(e, axis=1, keepdims=True)
    out_ref[...] = e * pl.reciprocal(denom, approx=True)


# --------------------------------------------------------------------------- #
# Parameter handling
# --------------------------------------------------------------------------- #
def init_params(key, n_inputs, n_outputs):
    """Deterministic init mirroring torch.nn.Linear default U(-1/sqrt(fan_in), .).

    Weights are stored already transposed to (in, out) so the kernel computes
    y = x @ W + b.
    """
    dims = [n_inputs, HIDDEN, HIDDEN, HIDDEN, HIDDEN, n_outputs]
    params = []
    for i in range(5):
        fan_in, fan_out = dims[i], dims[i + 1]
        key, kw, kb = jax.random.split(key, 3)
        bound = 1.0 / math.sqrt(fan_in)
        w = jax.random.uniform(kw, (fan_in, fan_out), jnp.float32, -bound, bound)
        b = jax.random.uniform(kb, (fan_out,), jnp.float32, -bound, bound)
        params.append((w, b))
    return params


def pack_params(params):
    """Pad / stack the 5 (w, b) pairs into 4 lane-dense operands.

    Call ONCE and reuse: weights are cast to bf16 (MXU-native) here so the
    per-forward wrapper does no weight work at all.
    """
    (w1, b1), (w2, b2), (w3, b3), (w4, b4), (w5, b5) = params
    f_in, hid = w1.shape
    n_out = w5.shape[1]

    w_in = (jnp.zeros((f_in, PAD), jnp.bfloat16)
            .at[:, :hid].set(w1.astype(jnp.bfloat16)))

    w_hid = jnp.zeros((3, PAD, PAD), jnp.bfloat16)
    for k, w in enumerate((w2, w3, w4)):
        w_hid = w_hid.at[k, :hid, :hid].set(w.astype(jnp.bfloat16))

    w_out = (jnp.zeros((PAD, PAD), jnp.bfloat16)
             .at[:hid, :n_out].set(w5.astype(jnp.bfloat16)))

    biases = jnp.zeros((8, PAD), jnp.float32)
    for k, b in enumerate((b1, b2, b3, b4)):
        biases = biases.at[k, :hid].set(b)
    # output bias: real lanes = b5, padded lanes = -1e30 (softmax mask)
    b_out = jnp.full((PAD,), NEG_INF, jnp.float32).at[:n_out].set(b5)
    biases = biases.at[4].set(b_out)

    return {"w_in": w_in, "w_hid": w_hid, "w_out": w_out, "biases": biases,
            "f_in": f_in, "n_out": n_out}


# --------------------------------------------------------------------------- #
# pallas_call wrapper
# --------------------------------------------------------------------------- #
def _run(x_p, packed, tb, b_pad, single_buffer_weights):
    f_in = x_p.shape[1]
    # Weights/biases are grid-invariant (constant index_map): request single
    # buffering to drop the pointless second VMEM buffer.
    wmode = pl.Buffered(1) if single_buffer_weights else None
    in_specs = [
        pl.BlockSpec((tb, f_in), lambda i: (i, 0)),                 # x tile
        pl.BlockSpec((f_in, PAD), lambda i: (0, 0),
                     pipeline_mode=wmode),                          # w_in
        pl.BlockSpec((3, PAD, PAD), lambda i: (0, 0, 0),
                     pipeline_mode=wmode),                          # w_hid
        pl.BlockSpec((PAD, PAD), lambda i: (0, 0),
                     pipeline_mode=wmode),                          # w_out
        pl.BlockSpec((8, PAD), lambda i: (0, 0),
                     pipeline_mode=wmode),                          # biases
    ]
    return pl.pallas_call(
        _dqn_kernel,
        out_shape=jax.ShapeDtypeStruct((b_pad, PAD), jnp.float32),
        grid_spec=pltpu.PrefetchScalarGridSpec(
            num_scalar_prefetch=0,
            grid=(b_pad // tb,),
            in_specs=in_specs,
            out_specs=pl.BlockSpec((tb, PAD), lambda i: (i, 0)),
        ),
        compiler_params=pltpu.CompilerParams(
            dimension_semantics=("parallel",),
        ),
    )(x_p, packed["w_in"], packed["w_hid"], packed["w_out"], packed["biases"])


def dqn_4l100_forward(x, packed, *, block_b=512):
    """x: (B, F_in) f32, packed = pack_params(params) -> (B, n_out) softmax."""
    B, f_in = x.shape
    assert f_in == packed["f_in"], "input feature dim mismatch with packed weights"
    x = x.astype(jnp.float32)

    # Batch tiling:
    #  * tiny batches -> one sublane-aligned tile;
    #  * mid/large batches -> >=2 grid steps so the "parallel" batch axis is
    #    sharded across both v7x TensorCores; cap tile at block_b (streaming
    #    roofline ~85% at 512 rows, VMEM cost trivial).
    if B <= 64:
        tb = max(8, _round_up(B, 8))
    else:
        tb = min(block_b, _round_up(-(-B // 2), 8))
    b_pad = _round_up(B, tb)

    # Only the batch dim is padded (no host-side 128-lane padding of x).
    if b_pad != B:
        x = jnp.pad(x, ((0, b_pad - B), (0, 0)))

    try:
        out_padded = _run(x, packed, tb, b_pad, single_buffer_weights=True)
    except Exception:
        # Fallback for jax builds that reject pipeline_mode=pl.Buffered(1).
        out_padded = _run(x, packed, tb, b_pad, single_buffer_weights=False)

    # TODO(synk): for a pure DQN acting loop, fuse argmax-over-actions into the
    # kernel epilogue and skip this slice entirely.
    return out_padded[:B, :packed["n_out"]]


# --------------------------------------------------------------------------- #
# Pure-JAX reference (f32)
# --------------------------------------------------------------------------- #
def reference_forward(x, params):
    h = x
    for i, (w, b) in enumerate(params):
        h = h @ w + b
        if i < len(params) - 1:
            h = jnp.maximum(h, 0.0)
    return jax.nn.softmax(h, axis=1)


if __name__ == "__main__":
    key = jax.random.PRNGKey(0)
    k_x, k_p = jax.random.split(key)

    batch, n_inputs, n_outputs = 2, 16, 4
    x = jax.random.normal(k_x, (batch, n_inputs), dtype=jnp.float32)
    params = init_params(k_p, n_inputs, n_outputs)
    packed = pack_params(params)          # pack ONCE, reuse for every forward

    out = dqn_4l100_forward(x, packed)
    out = jax.block_until_ready(out)

    ref = reference_forward(x, params)
    assert out.shape == (batch, n_outputs)
    # bf16 matmuls + approx reciprocal in the softmax -> modest tolerance
    assert jnp.allclose(out, ref, atol=2e-2, rtol=2e-2)
    assert jnp.allclose(jnp.sum(out, axis=1), jnp.ones((batch,)), atol=3e-3)

    # exercise the multi-tile (>=2 grid steps / megacore) path as well
    x_big = jax.random.normal(k_x, (300, n_inputs), dtype=jnp.float32)
    out_big = jax.block_until_ready(dqn_4l100_forward(x_big, packed))
    ref_big = reference_forward(x_big, params)
    assert out_big.shape == (300, n_outputs)
    assert jnp.allclose(out_big, ref_big, atol=2e-2, rtol=2e-2)

    print("KERNEL_OK")
</pallas_src>

<mosaic_0001>
module attributes {stable_mosaic.version = 11 : i64} {
  func.func @_dqn_kernel(%arg0: i32, %arg1: memref<8x16xf32, #tpu.memory_space<vmem>>, %arg2: memref<16x128xbf16, #tpu.memory_space<vmem>>, %arg3: memref<3x128x128xbf16, #tpu.memory_space<vmem>>, %arg4: memref<128x128xbf16, #tpu.memory_space<vmem>>, %arg5: memref<8x128xf32, #tpu.memory_space<vmem>>, %arg6: memref<8x128xf32, #tpu.memory_space<vmem>>) attributes {dimension_semantics = [#tpu.dimension_semantics<parallel>], iteration_bounds = array<i64: 1>, scalar_prefetch = 0 : i64, scratch_operands = 0 : i64, tpu.core_type = #tpu.core_type<tc>, window_params = [{transform_indices = @transform_0, window_bounds = array<i64: 8, 16>}, {pipeline_mode = #tpu.pipeline_mode<synchronous>, transform_indices = @transform_1, window_bounds = array<i64: 16, 128>}, {pipeline_mode = #tpu.pipeline_mode<synchronous>, transform_indices = @transform_2, window_bounds = array<i64: 3, 128, 128>}, {pipeline_mode = #tpu.pipeline_mode<synchronous>, transform_indices = @transform_3, window_bounds = array<i64: 128, 128>}, {pipeline_mode = #tpu.pipeline_mode<synchronous>, transform_indices = @transform_4, window_bounds = array<i64: 8, 128>}, {transform_indices = @transform_5, window_bounds = array<i64: 8, 128>}]} {
    %c0 = arith.constant 0 : index
    %c0_0 = arith.constant 0 : index
    %0 = vector.load %arg1[%c0, %c0_0] : memref<8x16xf32, #tpu.memory_space<vmem>>, vector<8x16xf32>
    %1 = arith.truncf %0 : vector<8x16xf32> to vector<8x16xbf16>
    %c0_1 = arith.constant 0 : index
    %c0_2 = arith.constant 0 : index
    %2 = vector.load %arg2[%c0_1, %c0_2] : memref<16x128xbf16, #tpu.memory_space<vmem>>, vector<16x128xbf16>
    %cst = arith.constant dense<0.000000e+00> : vector<8x128xf32>
    %3 = tpu.matmul %1, %2, %cst {dimension_numbers = #tpu.dot_dimension_numbers<[1], [0], [0], [1], [0, 0, 1, 1], [], []>} : vector<8x16xbf16>, vector<16x128xbf16>, vector<8x128xf32> -> vector<8x128xf32>
    %c0_3 = arith.constant 0 : index
    %c0_4 = arith.constant 0 : index
    %4 = vector.load %arg5[%c0_3, %c0_4] : memref<8x128xf32, #tpu.memory_space<vmem>>, vector<1x128xf32>
    %5 = vector.broadcast %4 : vector<1x128xf32> to vector<8x128xf32>
    %6 = arith.addf %3, %5 : vector<8x128xf32>
    %cst_5 = arith.constant 0.000000e+00 : f32
    %7 = vector.broadcast %cst_5 : f32 to vector<8x128xf32>
    %8 = arith.maximumf %6, %7 : vector<8x128xf32>
    %9 = arith.truncf %8 : vector<8x128xf32> to vector<8x128xbf16>
    %c0_6 = arith.constant 0 : index
    %c0_7 = arith.constant 0 : index
    %c0_8 = arith.constant 0 : index
    %10 = vector.load %arg3[%c0_6, %c0_7, %c0_8] : memref<3x128x128xbf16, #tpu.memory_space<vmem>>, vector<1x128x128xbf16>
    %11 = vector.shape_cast %10 : vector<1x128x128xbf16> to vector<128x128xbf16>
    %cst_9 = arith.constant dense<0.000000e+00> : vector<8x128xf32>
    %12 = tpu.matmul %9, %11, %cst_9 {dimension_numbers = #tpu.dot_dimension_numbers<[1], [0], [0], [1], [0, 0, 1, 1], [], []>} : vector<8x128xbf16>, vector<128x128xbf16>, vector<8x128xf32> -> vector<8x128xf32>
    %c1 = arith.constant 1 : index
    %c0_10 = arith.constant 0 : index
    %13 = vector.load %arg5[%c1, %c0_10] : memref<8x128xf32, #tpu.memory_space<vmem>>, vector<1x128xf32>
    %14 = vector.broadcast %13 : vector<1x128xf32> to vector<8x128xf32>
    %15 = arith.addf %12, %14 : vector<8x128xf32>
    %cst_11 = arith.constant 0.000000e+00 : f32
    %16 = vector.broadcast %cst_11 : f32 to vector<8x128xf32>
    %17 = arith.maximumf %15, %16 : vector<8x128xf32>
    %18 = arith.truncf %17 : vector<8x128xf32> to vector<8x128xbf16>
    %c1_12 = arith.constant 1 : index
    %c0_13 = arith.constant 0 : index
    %c0_14 = arith.constant 0 : index
    %19 = vector.load %arg3[%c1_12, %c0_13, %c0_14] : memref<3x128x128xbf16, #tpu.memory_space<vmem>>, vector<1x128x128xbf16>
    %20 = vector.shape_cast %19 : vector<1x128x128xbf16> to vector<128x128xbf16>
    %cst_15 = arith.constant dense<0.000000e+00> : vector<8x128xf32>
    %21 = tpu.matmul %18, %20, %cst_15 {dimension_numbers = #tpu.dot_dimension_numbers<[1], [0], [0], [1], [0, 0, 1, 1], [], []>} : vector<8x128xbf16>, vector<128x128xbf16>, vector<8x128xf32> -> vector<8x128xf32>
    %c2 = arith.constant 2 : index
    %c0_16 = arith.constant 0 : index
    %22 = vector.load %arg5[%c2, %c0_16] : memref<8x128xf32, #tpu.memory_space<vmem>>, vector<1x128xf32>
    %23 = vector.broadcast %22 : vector<1x128xf32> to vector<8x128xf32>
    %24 = arith.addf %21, %23 : vector<8x128xf32>
    %cst_17 = arith.constant 0.000000e+00 : f32
    %25 = vector.broadcast %cst_17 : f32 to vector<8x128xf32>
    %26 = arith.maximumf %24, %25 : vector<8x128xf32>
    %27 = arith.truncf %26 : vector<8x128xf32> to vector<8x128xbf16>
    %c2_18 = arith.constant 2 : index
    %c0_19 = arith.constant 0 : index
    %c0_20 = arith.constant 0 : index
    %28 = vector.load %arg3[%c2_18, %c0_19, %c0_20] : memref<3x128x128xbf16, #tpu.memory_space<vmem>>, vector<1x128x128xbf16>
    %29 = vector.shape_cast %28 : vector<1x128x128xbf16> to vector<128x128xbf16>
    %cst_21 = arith.constant dense<0.000000e+00> : vector<8x128xf32>
    %30 = tpu.matmul %27, %29, %cst_21 {dimension_numbers = #tpu.dot_dimension_numbers<[1], [0], [0], [1], [0, 0, 1, 1], [], []>} : vector<8x128xbf16>, vector<128x128xbf16>, vector<8x128xf32> -> vector<8x128xf32>
    %c3 = arith.constant 3 : index
    %c0_22 = arith.constant 0 : index
    %31 = vector.load %arg5[%c3, %c0_22] : memref<8x128xf32, #tpu.memory_space<vmem>>, vector<1x128xf32>
    %32 = vector.broadcast %31 : vector<1x128xf32> to vector<8x128xf32>
    %33 = arith.addf %30, %32 : vector<8x128xf32>
    %cst_23 = arith.constant 0.000000e+00 : f32
    %34 = vector.broadcast %cst_23 : f32 to vector<8x128xf32>
    %35 = arith.maximumf %33, %34 : vector<8x128xf32>
    %36 = arith.truncf %35 : vector<8x128xf32> to vector<8x128xbf16>
    %c0_24 = arith.constant 0 : index
    %c0_25 = arith.constant 0 : index
    %37 = vector.load %arg4[%c0_24, %c0_25] : memref<128x128xbf16, #tpu.memory_space<vmem>>, vector<128x128xbf16>
    %cst_26 = arith.constant dense<0.000000e+00> : vector<8x128xf32>
    %38 = tpu.matmul %36, %37, %cst_26 {dimension_numbers = #tpu.dot_dimension_numbers<[1], [0], [0], [1], [0, 0, 1, 1], [], []>} : vector<8x128xbf16>, vector<128x128xbf16>, vector<8x128xf32> -> vector<8x128xf32>
    %c4 = arith.constant 4 : index
    %c0_27 = arith.constant 0 : index
    %39 = vector.load %arg5[%c4, %c0_27] : memref<8x128xf32, #tpu.memory_space<vmem>>, vector<1x128xf32>
    %40 = vector.broadcast %39 : vector<1x128xf32> to vector<8x128xf32>
    %41 = arith.addf %38, %40 : vector<8x128xf32>
    %cst_28 = arith.constant dense<0xFF800000> : vector<8xf32>
    %42 = vector.multi_reduction <maximumf>, %41, %cst_28 [1] : vector<8x128xf32> to vector<8xf32>
    %43 = vector.shape_cast %42 : vector<8xf32> to vector<8x1xf32>
    %44 = vector.broadcast %43 : vector<8x1xf32> to vector<8x128xf32>
    %45 = arith.subf %41, %44 : vector<8x128xf32>
    %46 = math.exp %45 : vector<8x128xf32>
    %cst_29 = arith.constant dense<0.000000e+00> : vector<8xf32>
    %47 = vector.multi_reduction <add>, %46, %cst_29 [1] : vector<8x128xf32> to vector<8xf32>
    %48 = vector.shape_cast %47 : vector<8xf32> to vector<8x1xf32>
    %49 = tpu.reciprocal %48 {approx = true} : vector<8x1xf32> -> vector<8x1xf32>
    %50 = vector.broadcast %49 : vector<8x1xf32> to vector<8x128xf32>
    %51 = arith.mulf %46, %50 : vector<8x128xf32>
    %c0_30 = arith.constant 0 : index
    %c0_31 = arith.constant 0 : index
    %52 = vector.load %arg6[%c0_30, %c0_31] : memref<8x128xf32, #tpu.memory_space<vmem>>, vector<8x128xf32>
    tpu.vector_store %arg6[%c0_30, %c0_31], %51 {strides = array<i32>} : memref<8x128xf32, #tpu.memory_space<vmem>>, vector<8x128xf32>,
    return
  }
  func.func @transform_0(%arg0: i32) -> (i32, i32) {
    %c0_i32 = arith.constant 0 : i32
    %c0_i32_0 = arith.constant 0 : i32
    return %arg0, %c0_i32 : i32, i32
  }
  func.func @transform_1(%arg0: i32) -> (i32, i32) {
    %c0_i32 = arith.constant 0 : i32
    %c0_i32_0 = arith.constant 0 : i32
    %c0_i32_1 = arith.constant 0 : i32
    return %c0_i32, %c0_i32_0 : i32, i32
  }
  func.func @transform_2(%arg0: i32) -> (i32, i32, i32) {
    %c0_i32 = arith.constant 0 : i32
    %c0_i32_0 = arith.constant 0 : i32
    %c0_i32_1 = arith.constant 0 : i32
    %c0_i32_2 = arith.constant 0 : i32
    return %c0_i32, %c0_i32_0, %c0_i32_1 : i32, i32, i32
  }
  func.func @transform_3(%arg0: i32) -> (i32, i32) {
    %c0_i32 = arith.constant 0 : i32
    %c0_i32_0 = arith.constant 0 : i32
    %c0_i32_1 = arith.constant 0 : i32
    return %c0_i32, %c0_i32_0 : i32, i32
  }
  func.func @transform_4(%arg0: i32) -> (i32, i32) {
    %c0_i32 = arith.constant 0 : i32
    %c0_i32_0 = arith.constant 0 : i32
    %c0_i32_1 = arith.constant 0 : i32
    return %c0_i32, %c0_i32_0 : i32, i32
  }
  func.func @transform_5(%arg0: i32) -> (i32, i32) {
    %c0_i32 = arith.constant 0 : i32
    %c0_i32_0 = arith.constant 0 : i32
    return %arg0, %c0_i32 : i32, i32
  }
}

module attributes {stable_mosaic.version = 11 : i64} {
  func.func @_dqn_kernel(%arg0: i32, %arg1: memref<8x16xf32, #tpu.memory_space<vmem>>, %arg2: memref<16x128xbf16, #tpu.memory_space<vmem>>, %arg3: memref<3x128x128xbf16, #tpu.memory_space<vmem>>, %arg4: memref<128x128xbf16, #tpu.memory_space<vmem>>, %arg5: memref<8x128xf32, #tpu.memory_space<vmem>>, %arg6: memref<8x128xf32, #tpu.memory_space<vmem>>) attributes {dimension_semantics = [#tpu.dimension_semantics<parallel>], iteration_bounds = array<i64: 1>, scalar_prefetch = 0 : i64, scratch_operands = 0 : i64, tpu.core_type = #tpu.core_type<tc>, window_params = [{transform_indices = @transform_0, window_bounds = array<i64: 8, 16>}, {pipeline_mode = #tpu.pipeline_mode<synchronous>, transform_indices = @transform_1, window_bounds = array<i64: 16, 128>}, {pipeline_mode = #tpu.pipeline_mode<synchronous>, transform_indices = @transform_2, window_bounds = array<i64: 3, 128, 128>}, {pipeline_mode = #tpu.pipeline_mode<synchronous>, transform_indices = @transform_3, window_bounds = array<i64: 128, 128>}, {pipeline_mode = #tpu.pipeline_mode<synchronous>, transform_indices = @transform_4, window_bounds = array<i64: 8, 128>}, {transform_indices = @transform_5, window_bounds = array<i64: 8, 128>}]} {
    %c0 = arith.constant 0 : index
    %c0_0 = arith.constant 0 : index
    %0 = vector.load %arg1[%c0, %c0_0] : memref<8x16xf32, #tpu.memory_space<vmem>>, vector<8x16xf32>
    %1 = arith.truncf %0 : vector<8x16xf32> to vector<8x16xbf16>
    %c0_1 = arith.constant 0 : index
    %c0_2 = arith.constant 0 : index
    %2 = vector.load %arg2[%c0_1, %c0_2] : memref<16x128xbf16, #tpu.memory_space<vmem>>, vector<16x128xbf16>
    %cst = arith.constant dense<0.000000e+00> : vector<8x128xf32>
    %3 = tpu.matmul %1, %2, %cst {dimension_numbers = #tpu.dot_dimension_numbers<[1], [0], [0], [1], [0, 0, 1, 1], [], []>} : vector<8x16xbf16>, vector<16x128xbf16>, vector<8x128xf32> -> vector<8x128xf32>
    %c0_3 = arith.constant 0 : index
    %c0_4 = arith.constant 0 : index
    %4 = vector.load %arg5[%c0_3, %c0_4] : memref<8x128xf32, #tpu.memory_space<vmem>>, vector<1x128xf32>
    %5 = vector.broadcast %4 : vector<1x128xf32> to vector<8x128xf32>
    %6 = arith.addf %3, %5 : vector<8x128xf32>
    %cst_5 = arith.constant 0.000000e+00 : f32
    %7 = vector.broadcast %cst_5 : f32 to vector<8x128xf32>
    %8 = arith.maximumf %6, %7 : vector<8x128xf32>
    %9 = arith.truncf %8 : vector<8x128xf32> to vector<8x128xbf16>
    %c0_6 = arith.constant 0 : index
    %c0_7 = arith.constant 0 : index
    %c0_8 = arith.constant 0 : index
    %10 = vector.load %arg3[%c0_6, %c0_7, %c0_8] : memref<3x128x128xbf16, #tpu.memory_space<vmem>>, vector<1x128x128xbf16>
    %11 = vector.shape_cast %10 : vector<1x128x128xbf16> to vector<128x128xbf16>
    %cst_9 = arith.constant dense<0.000000e+00> : vector<8x128xf32>
    %12 = tpu.matmul %9, %11, %cst_9 {dimension_numbers = #tpu.dot_dimension_numbers<[1], [0], [0], [1], [0, 0, 1, 1], [], []>} : vector<8x128xbf16>, vector<128x128xbf16>, vector<8x128xf32> -> vector<8x128xf32>
    %c1 = arith.constant 1 : index
    %c0_10 = arith.constant 0 : index
    %13 = vector.load %arg5[%c1, %c0_10] : memref<8x128xf32, #tpu.memory_space<vmem>>, vector<1x128xf32>
    %14 = vector.broadcast %13 : vector<1x128xf32> to vector<8x128xf32>
    %15 = arith.addf %12, %14 : vector<8x128xf32>
    %cst_11 = arith.constant 0.000000e+00 : f32
    %16 = vector.broadcast %cst_11 : f32 to vector<8x128xf32>
    %17 = arith.maximumf %15, %16 : vector<8x128xf32>
    %18 = arith.truncf %17 : vector<8x128xf32> to vector<8x128xbf16>
    %c1_12 = arith.constant 1 : index
    %c0_13 = arith.constant 0 : index
    %c0_14 = arith.constant 0 : index
    %19 = vector.load %arg3[%c1_12, %c0_13, %c0_14] : memref<3x128x128xbf16, #tpu.memory_space<vmem>>, vector<1x128x128xbf16>
    %20 = vector.shape_cast %19 : vector<1x128x128xbf16> to vector<128x128xbf16>
    %cst_15 = arith.constant dense<0.000000e+00> : vector<8x128xf32>
    %21 = tpu.matmul %18, %20, %cst_15 {dimension_numbers = #tpu.dot_dimension_numbers<[1], [0], [0], [1], [0, 0, 1, 1], [], []>} : vector<8x128xbf16>, vector<128x128xbf16>, vector<8x128xf32> -> vector<8x128xf32>
    %c2 = arith.constant 2 : index
    %c0_16 = arith.constant 0 : index
    %22 = vector.load %arg5[%c2, %c0_16] : memref<8x128xf32, #tpu.memory_space<vmem>>, vector<1x128xf32>
    %23 = vector.broadcast %22 : vector<1x128xf32> to vector<8x128xf32>
    %24 = arith.addf %21, %23 : vector<8x128xf32>
    %cst_17 = arith.constant 0.000000e+00 : f32
    %25 = vector.broadcast %cst_17 : f32 to vector<8x128xf32>
    %26 = arith.maximumf %24, %25 : vector<8x128xf32>
    %27 = arith.truncf %26 : vector<8x128xf32> to vector<8x128xbf16>
    %c2_18 = arith.constant 2 : index
    %c0_19 = arith.constant 0 : index
    %c0_20 = arith.constant 0 : index
    %28 = vector.load %arg3[%c2_18, %c0_19, %c0_20] : memref<3x128x128xbf16, #tpu.memory_space<vmem>>, vector<1x128x128xbf16>
    %29 = vector.shape_cast %28 : vector<1x128x128xbf16> to vector<128x128xbf16>
    %cst_21 = arith.constant dense<0.000000e+00> : vector<8x128xf32>
    %30 = tpu.matmul %27, %29, %cst_21 {dimension_numbers = #tpu.dot_dimension_numbers<[1], [0], [0], [1], [0, 0, 1, 1], [], []>} : vector<8x128xbf16>, vector<128x128xbf16>, vector<8x128xf32> -> vector<8x128xf32>
    %c3 = arith.constant 3 : index
    %c0_22 = arith.constant 0 : index
    %31 = vector.load %arg5[%c3, %c0_22] : memref<8x128xf32, #tpu.memory_space<vmem>>, vector<1x128xf32>
    %32 = vector.broadcast %31 : vector<1x128xf32> to vector<8x128xf32>
    %33 = arith.addf %30, %32 : vector<8x128xf32>
    %cst_23 = arith.constant 0.000000e+00 : f32
    %34 = vector.broadcast %cst_23 : f32 to vector<8x128xf32>
    %35 = arith.maximumf %33, %34 : vector<8x128xf32>
    %36 = arith.truncf %35 : vector<8x128xf32> to vector<8x128xbf16>
    %c0_24 = arith.constant 0 : index
    %c0_25 = arith.constant 0 : index
    %37 = vector.load %arg4[%c0_24, %c0_25] : memref<128x128xbf16, #tpu.memory_space<vmem>>, vector<128x128xbf16>
    %cst_26 = arith.constant dense<0.000000e+00> : vector<8x128xf32>
    %38 = tpu.matmul %36, %37, %cst_26 {dimension_numbers = #tpu.dot_dimension_numbers<[1], [0], [0], [1], [0, 0, 1, 1], [], []>} : vector<8x128xbf16>, vector<128x128xbf16>, vector<8x128xf32> -> vector<8x128xf32>
    %c4 = arith.constant 4 : index
    %c0_27 = arith.constant 0 : index
    %39 = vector.load %arg5[%c4, %c0_27] : memref<8x128xf32, #tpu.memory_space<vmem>>, vector<1x128xf32>
    %40 = vector.broadcast %39 : vector<1x128xf32> to vector<8x128xf32>
    %41 = arith.addf %38, %40 : vector<8x128xf32>
    %cst_28 = arith.constant dense<0xFF800000> : vector<8xf32>
    %42 = vector.multi_reduction <maximumf>, %41, %cst_28 [1] : vector<8x128xf32> to vector<8xf32>
    %43 = vector.shape_cast %42 : vector<8xf32> to vector<8x1xf32>
    %44 = vector.broadcast %43 : vector<8x1xf32> to vector<8x128xf32>
    %45 = arith.subf %41, %44 : vector<8x128xf32>
    %46 = math.exp %45 : vector<8x128xf32>
    %cst_29 = arith.constant dense<0.000000e+00> : vector<8xf32>
    %47 = vector.multi_reduction <add>, %46, %cst_29 [1] : vector<8x128xf32> to vector<8xf32>
    %48 = vector.shape_cast %47 : vector<8xf32> to vector<8x1xf32>
    %49 = tpu.reciprocal %48 {approx = true} : vector<8x1xf32> -> vector<8x1xf32>
    %50 = vector.broadcast %49 : vector<8x1xf32> to vector<8x128xf32>
    %51 = arith.mulf %46, %50 : vector<8x128xf32>
    %c0_30 = arith.constant 0 : index
    %c0_31 = arith.constant 0 : index
    %52 = vector.load %arg6[%c0_30, %c0_31] : memref<8x128xf32, #tpu.memory_space<vmem>>, vector<8x128xf32>
    tpu.vector_store %arg6[%c0_30, %c0_31], %51 {strides = array<i32>} : memref<8x128xf32, #tpu.memory_space<vmem>>, vector<8x128xf32>,
    return
  }
  func.func @transform_0(%arg0: i32) -> (i32, i32) {
    %c0_i32 = arith.constant 0 : i32
    %c0_i32_0 = arith.constant 0 : i32
    return %arg0, %c0_i32 : i32, i32
  }
  func.func @transform_1(%arg0: i32) -> (i32, i32) {
    %c0_i32 = arith.constant 0 : i32
    %c0_i32_0 = arith.constant 0 : i32
    %c0_i32_1 = arith.constant 0 : i32
    return %c0_i32, %c0_i32_0 : i32, i32
  }
  func.func @transform_2(%arg0: i32) -> (i32, i32, i32) {
    %c0_i32 = arith.constant 0 : i32
    %c0_i32_0 = arith.constant 0 : i32
    %c0_i32_1 = arith.constant 0 : i32
    %c0_i32_2 = arith.constant 0 : i32
    return %c0_i32, %c0_i32_0, %c0_i32_1 : i32, i32, i32
  }
  func.func @transform_3(%arg0: i32) -> (i32, i32) {
    %c0_i32 = arith.constant 0 : i32
    %c0_i32_0 = arith.constant 0 : i32
    %c0_i32_1 = arith.constant 0 : i32
    return %c0_i32, %c0_i32_0 : i32, i32
  }
  func.func @transform_4(%arg0: i32) -> (i32, i32) {
    %c0_i32 = arith.constant 0 : i32
    %c0_i32_0 = arith.constant 0 : i32
    %c0_i32_1 = arith.constant 0 : i32
    return %c0_i32, %c0_i32_0 : i32, i32
  }
  func.func @transform_5(%arg0: i32) -> (i32, i32) {
    %c0_i32 = arith.constant 0 : i32
    %c0_i32_0 = arith.constant 0 : i32
    return %arg0, %c0_i32 : i32, i32
  }
}

</mosaic_0001>

<bundles_post_ra>
// kernel: tpu_custom_call.1
= control target key start
LH: loop header
LB: loop body
LE: loop exit
PB: predicated region body
PF: predicated region fallthrough
CT: control target
= control target key end

     0   :  { %10 = vsyncpa [#allocation3], 0  ;;  %s1100_s0 = inlined_call_operand.hbm [shape: f32[8,16], index: 0, kind: input, shape index: {}]   ;;  %s1101_s1 = inlined_call_operand.hbm [shape: bf16[16,128], index: 1, kind: input, shape index: {}]   ;;  %s1102_s2 = inlined_call_operand.hbm [shape: bf16[3,128,128], index: 2, kind: input, shape index: {}]   ;;  %s1103_s3 = inlined_call_operand.hbm [shape: bf16[128,128], index: 3, kind: input, shape index: {}]   ;;  %s1104_s4 = inlined_call_operand.vmem [shape: f32[8,128], index: 4, kind: input, shape index: {}]   ;;  %s1105_s5 = inlined_call_operand.hbm [shape: f32[8,128], index: 5, kind: output, shape index: {}]  }
   0x1   :  { %11 = vsyncpa [#allocation6], 0 }
   0x2   :  { %12 = vsyncpa [#allocation9], 0 }
   0x3   :  { %13 = vsyncpa [#allocation4], 0  ;;  %s934_s18 = smov [#allocation5]   ;;  %s816_s22 = scalar_lea.hbm %s1101_s1, 128 }
   0x4   :  { %s29_s19 = sshll.u32 %s934_s18, 4  ;;  %p817_p0 = scmp.ne.s32.totalorder %s1101_s1, %s816_s22  ;;  %s30_s19 = int_to_ptr.vmem [resolvable:$true] %s29_s19 }
   0x5   :  { %p820_p1 = scmp.lt.u32.totalorder %s816_s22, %s1101_s1 }
   0x7   :  { %p822_p2 = pnand %p820_p1, %p817_p0 }
   0x9   :  { %825 = shalt.err (!%p822_p2)
}
   0xa   :  { %s826_s27 = scalar_lea.vmem %s30_s19, 128  ;;  %p831_p4 = scmp.lt.s32.totalorder %s30_s19, %s30_s19 }
   0xb   :  { %p827_p3 = scmp.ne.s32.totalorder %s30_s19, %s826_s27  ;;  %p832_p5 = scmp.lt.s32.totalorder %s826_s27, %s826_s27 }
   0xd   :  { %p833_p6 = por %p832_p5, %p831_p4 }
   0xf   :  { %p834_p7 = pnand %p833_p6, %p827_p3 }
  0x11   :  { %837 = shalt.err (!%p834_p7)
}
  0x12   :  { %s935_s28 = smov 64   ;;  %s936_s29 = smov 4  }
  0x13   :  { %35 = dma.hbm_to_vmem [thread:$0]  %s1101_s1, 128, %s30_s19, [#allocation6], %s935_s28, %s935_s28, %s936_s29  }
  0x14   :  { %s937_s7 = smov [#allocation2]   ;;  %s938_s9 = smov [#allocation7]  }
  0x15   :  { %s20_s8 = sshll.u32 %s937_s7, 4  ;;  %s41_s10 = sshll.u32 %s938_s9, 4  ;;  %s21_s8 = int_to_ptr.vmem [resolvable:$true] %s20_s8  ;;  %s42_s10 = int_to_ptr.vmem [resolvable:$true] %s41_s10 }
  0x16   :  { %s838_s13 = scalar_lea.hbm %s1100_s0, 128 }
  0x17   :  { %p839_p8 = scmp.ne.s32.totalorder %s1100_s0, %s838_s13  ;;  %p842_p9 = scmp.lt.u32.totalorder %s838_s13, %s1100_s0 }
  0x19   :  { %p844_p10 = pnand %p842_p9, %p839_p8 }
  0x1b   :  { %847 = shalt.err (!%p844_p10)
}
  0x1c   :  { %s848_s1 = scalar_lea.vmem %s21_s8, 128  ;;  %p853_p12 = scmp.lt.s32.totalorder %s21_s8, %s21_s8 }
  0x1d   :  { %p849_p11 = scmp.ne.s32.totalorder %s21_s8, %s848_s1  ;;  %p854_p13 = scmp.lt.s32.totalorder %s848_s1, %s848_s1 }
  0x1f   :  { %p855_p0 = por %p854_p13, %p853_p12 }
  0x21   :  { %p856_p1 = pnand %p855_p0, %p849_p11 }
  0x23   :  { %859 = shalt.err (!%p856_p1)
}
  0x24   :  { %23 = dma.hbm_to_vmem [thread:$0]  %s1100_s0, 128, %s21_s8, [#allocation3]  }
  0x25   :  { %s860_s22 = scalar_lea.hbm %s1102_s2, 3072 }
  0x26   :  { %p861_p2 = scmp.ne.s32.totalorder %s1102_s2, %s860_s22  ;;  %p864_p3 = scmp.lt.u32.totalorder %s860_s22, %s1102_s2 }
  0x28   :  { %p866_p4 = pnand %p864_p3, %p861_p2 }
  0x2a   :  { %869 = shalt.err (!%p866_p4)
}
  0x2b   :  { %s870_s27 = scalar_lea.vmem %s42_s10, 3072  ;;  %p875_p6 = scmp.lt.s32.totalorder %s42_s10, %s42_s10 }
  0x2c   :  { %p871_p5 = scmp.ne.s32.totalorder %s42_s10, %s870_s27  ;;  %p876_p7 = scmp.lt.s32.totalorder %s870_s27, %s870_s27 }
  0x2e   :  { %p877_p8 = por %p876_p7, %p875_p6 }
  0x30   :  { %p878_p9 = pnand %p877_p8, %p871_p5 }
  0x32   :  { %881 = shalt.err (!%p878_p9)
}
  0x33   :  { %47 = dma.hbm_to_vmem [thread:$0]  %s1102_s2, 3072, %s42_s10, [#allocation6], %s935_s28, %s935_s28, %s936_s29  }
  0x34   :  { %s939_s6 = smov [#allocation8]   ;;  %s882_s11 = scalar_lea.hbm %s1103_s3, 1024 }
  0x35   :  { %s53_s7 = sshll.u32 %s939_s6, 4  ;;  %p883_p10 = scmp.ne.s32.totalorder %s1103_s3, %s882_s11  ;;  %s54_s7 = int_to_ptr.vmem [resolvable:$true] %s53_s7 }
  0x36   :  { %p886_p11 = scmp.lt.u32.totalorder %s882_s11, %s1103_s3 }
  0x38   :  { %p888_p12 = pnand %p886_p11, %p883_p10 }
  0x3a   :  { %891 = shalt.err (!%p888_p12)
}
  0x3b   :  { %s892_s16 = scalar_lea.vmem %s54_s7, 1024  ;;  %p897_p0 = scmp.lt.s32.totalorder %s54_s7, %s54_s7 }
  0x3c   :  { %p893_p13 = scmp.ne.s32.totalorder %s54_s7, %s892_s16  ;;  %p898_p1 = scmp.lt.s32.totalorder %s892_s16, %s892_s16 }
  0x3e   :  { %p899_p2 = por %p898_p1, %p897_p0 }
  0x40   :  { %p900_p3 = pnand %p899_p2, %p893_p13 }
  0x42   :  { %903 = shalt.err (!%p900_p3)
}
  0x43   :  { %59 = dma.hbm_to_vmem [thread:$0]  %s1103_s3, 1024, %s54_s7, [#allocation9], %s935_s28, %s935_s28, %s936_s29  }
  0x44   :  { %926 = dma.done.wait [#allocation3], 128  }
  0x45   :  { %927 = vsyncadd [#allocation3], 4294967168 }
  0x46   :  { %928 = dma.done.wait [#allocation6], 3200  }
  0x47   :  { %929 = vsyncadd [#allocation6], 4294964096 }
  0x48   :  { %930 = dma.done.wait [#allocation9], 1024  }
  0x49   :  { %931 = vsyncadd [#allocation9], 4294966272  ;;  %v940_v0 = vmov 0.0   ;;  %vm941_vm0 = vmmov 0   ;;  %v779_v1 = vld [vmem:[#allocation5] sm:$0xff]   ;;  %v75_v2 = vld [vmem:[#allocation2] sm:$0xff] }
  0x4a   :  { %684 = vmatprep.subr.bf16.mxu0 %v940_v0  ;;  %686 = vmatprep.mubr.msk.bf16.mxu0 %vm941_vm0, %v940_v0  ;;  %v76_v3 = vpack.c.bf16 %v75_v2, %v75_v2  ;;  %vm90_vm1 = vcmask 130048   ;;  %v780_v4 = vld [vmem:[#allocation7] sm:$0xff]   ;;  %v781_v5 = vld [vmem:[#allocation7 + $0x8] sm:$0xff]   ;;  %v782_v6 = vld [vmem:[#allocation7 + $0x10] sm:$0xff]   ;;  %s942_s23 = smov [#allocation10]  }
  0x4b   :  { %690 = vmatprep.subr.bf16.mxu1 %v940_v0  ;;  %706 = vmatprep.mubr.msk.bf16.mxu1 %vm941_vm0, %v940_v0  ;;  %v783_v7 = vld [vmem:[#allocation7 + $0x18] sm:$0xff]   ;;  %v784_v8 = vld [vmem:[#allocation7 + $0x20] sm:$0xff]   ;;  %v785_v9 = vld [vmem:[#allocation7 + $0x28] sm:$0xff]   ;;  %s596_s24 = sshll.u32 %s942_s23, 4  ;;  %s597_s24 = int_to_ptr.vmem [resolvable:$true] %s596_s24 }
  0x4c   :  { %685 = vmatpush3.bf16.msra.mxu0 %v779_v1  ;;  %691 = vmatpush3.bf16.msra.mxu1 %v780_v4  ;;  %v786_v10 = vld [vmem:[#allocation7 + $0x30] sm:$0xff]   ;;  %v787_v11 = vld [vmem:[#allocation7 + $0x38] sm:$0xff]   ;;  %v788_v12 = vld [vmem:[#allocation7 + $0x40] sm:$0xff]   ;;  %p909_p5 = scmp.lt.s32.totalorder %s597_s24, %s597_s24 }
  0x4d   :  { %710 = vmatprep.subr.bf16.mxu0 %v940_v0  ;;  %692 = vmatprep.subr.bf16.mxu1 %v940_v0  ;;  %v789_v13 = vld [vmem:[#allocation7 + $0x48] sm:$0xff]   ;;  %v790_v14 = vld [vmem:[#allocation7 + $0x50] sm:$0xff]   ;;  %v791_v15 = vld [vmem:[#allocation7 + $0x58] sm:$0xff]  }
  0x4e   :  { %v792_v16 = vld [vmem:[#allocation7 + $0x60] sm:$0xff]   ;;  %v793_v17 = vld [vmem:[#allocation7 + $0x68] sm:$0xff]   ;;  %v607_v18 = vld [vmem:[%s1104_s4] ss:$0 sm:$0xff] }
  0x4f   :  { %687 = vmatmul.mubr.msk.bf16.vlgmr.msra.gmra.mrb[0].mxu0 %vm90_vm1, %v76_v3  ;;  %v794_v26 = vld [vmem:[#allocation7 + $0x70] sm:$0xff]   ;;  %v795_v27 = vld [vmem:[#allocation7 + $0x78] sm:$0xff]   ;;  %v796_v28 = vld [vmem:[#allocation7 + $0x80] sm:$0xff]  }
  0x50   :  { %726 = vmatprep.mubr.msk.bf16.mxu0 %vm941_vm0, %v940_v0  ;;  %693 = vmatpush3.bf16.msra.mxu1 %v781_v5  ;;  %v797_v29 = vld [vmem:[#allocation7 + $0x88] sm:$0xff]   ;;  %v798_v30 = vld [vmem:[#allocation7 + $0x90] sm:$0xff]   ;;  %v799_v31 = vld [vmem:[#allocation7 + $0x98] sm:$0xff]  }
  0x51   :  { %694 = vmatprep.subr.bf16.mxu1 %v940_v0  ;;  %711 = vmatpush3.bf16.msra.mxu0 %v788_v12  ;;  %v800_v32 = vld [vmem:[#allocation7 + $0xa0] sm:$0xff]   ;;  %v801_v33 = vld [vmem:[#allocation7 + $0xa8] sm:$0xff]   ;;  %v610_v34 = vld [vmem:[%s1104_s4 + $0x1] ss:$0 sm:$0xff] }
  0x52   :  { %712 = vmatprep.subr.bf16.mxu0 %v940_v0  ;;  %v802_v42 = vld [vmem:[#allocation7 + $0xb0] sm:$0xff]   ;;  %v803_v43 = vld [vmem:[#allocation7 + $0xb8] sm:$0xff]   ;;  %v804_v44 = vld [vmem:[#allocation8] sm:$0xff]  }
  0x53   :  { %v805_v45 = vld [vmem:[#allocation8 + $0x8] sm:$0xff]   ;;  %v806_v46 = vld [vmem:[#allocation8 + $0x10] sm:$0xff]   ;;  %v807_v47 = vld [vmem:[#allocation8 + $0x18] sm:$0xff]  }
  0x54   :  { %695 = vmatpush3.bf16.msra.mxu1 %v782_v6  ;;  %v808_v48 = vld [vmem:[#allocation8 + $0x20] sm:$0xff]   ;;  %v809_v49 = vld [vmem:[#allocation8 + $0x28] sm:$0xff]   ;;  %v619_v50 = vld [vmem:[%s1104_s4 + $0x2] ss:$0 sm:$0xff] }
  0x55   :  { %696 = vmatprep.subr.bf16.mxu1 %v940_v0  ;;  %713 = vmatpush3.bf16.msra.mxu0 %v789_v13  ;;  %v810_v58 = vld [vmem:[#allocation8 + $0x30] sm:$0xff]   ;;  %v811_v59 = vld [vmem:[#allocation8 + $0x38] sm:$0xff]  }
  0x56   :  { %714 = vmatprep.subr.bf16.mxu0 %v940_v0  ;;  %v628_v60 = vld [vmem:[%s1104_s4 + $0x3] ss:$0 sm:$0xff]  ;;  %v637_v5 = vld [vmem:[%s1104_s4 + $0x4] ss:$0 sm:$0xff]  ;;  %s904_s4 = scalar_lea.vmem %s597_s24, 128 }
  0x57   :  { %p905_p4 = scmp.ne.s32.totalorder %s597_s24, %s904_s4  ;;  %p910_p6 = scmp.lt.s32.totalorder %s904_s4, %s904_s4 }
  0x58   :  { %697 = vmatpush3.bf16.msra.mxu1 %v783_v7 }
  0x59   :  { %698 = vmatprep.subr.bf16.mxu1 %v940_v0  ;;  %715 = vmatpush3.bf16.msra.mxu0 %v790_v14  ;;  %p911_p7 = por %p910_p6, %p909_p5 }
  0x5a   :  { %716 = vmatprep.subr.bf16.mxu0 %v940_v0 }
  0x5b   :  { %p912_p8 = pnand %p911_p7, %p905_p4 }
  0x5c   :  { %699 = vmatpush3.bf16.msra.mxu1 %v784_v8 }
  0x5d   :  { %700 = vmatprep.subr.bf16.mxu1 %v940_v0  ;;  %717 = vmatpush3.bf16.msra.mxu0 %v791_v15 }
  0x5e   :  { %718 = vmatprep.subr.bf16.mxu0 %v940_v0 }
  0x60   :  { %701 = vmatpush3.bf16.msra.mxu1 %v785_v9 }
  0x61   :  { %702 = vmatprep.subr.bf16.mxu1 %v940_v0  ;;  %719 = vmatpush3.bf16.msra.mxu0 %v792_v16 }
  0x62   :  { %720 = vmatprep.subr.bf16.mxu0 %v940_v0 }
  0x64   :  { %703 = vmatpush3.bf16.msra.mxu1 %v786_v10 }
  0x65   :  { %704 = vmatprep.subr.bf16.mxu1 %v940_v0  ;;  %721 = vmatpush3.bf16.msra.mxu0 %v793_v17 }
  0x66   :  { %722 = vmatprep.subr.bf16.mxu0 %v940_v0 }
  0x68   :  { %705 = vmatpush3.bf16.msra.mxu1 %v787_v11 }
  0x69   :  { %730 = vmatprep.subr.bf16.mxu1 %v940_v0  ;;  %723 = vmatpush3.bf16.msra.mxu0 %v794_v26 }
  0x6a   :  { %724 = vmatprep.subr.bf16.mxu0 %v940_v0 }
  0x6d   :  { %725 = vmatpush3.bf16.msra.mxu0 %v795_v27 }
  0x6e   :  { %750 = vmatprep.subr.bf16.mxu0 %v940_v0 }
 0x122   :  { %v128_v19 = vpop.f32.mrb[0].mxu0 }
 0x123   :  { %v129_v20 = vadd.f32 %v607_v18, %v128_v19  ;;  %v688_v21 = vpop.f32.mrb[1].mxu0 }
 0x124   :  { %v131_v22 = vpop.f32.mrb[2].mxu0 }
 0x125   :  { %v134_v23 = vmax.f32 %v129_v20, 0.0  ;;  %v689_v24 = vpop.f32.mrb[3].mxu0 }
 0x127   :  { %v135_v25 = vpack.c.bf16 %v134_v23, %v134_v23 }
 0x129   :  { %707 = vmatmul.mubr.bf16.vlgmr.msra.gmra.mrb[0].mxu1 %v135_v25 }
 0x12a   :  { %746 = vmatprep.mubr.msk.bf16.mxu1 %vm941_vm0, %v940_v0  ;;  %731 = vmatpush3.bf16.msra.mxu1 %v796_v28 }
 0x12b   :  { %732 = vmatprep.subr.bf16.mxu1 %v940_v0 }
 0x12e   :  { %733 = vmatpush3.bf16.msra.mxu1 %v797_v29 }
 0x12f   :  { %734 = vmatprep.subr.bf16.mxu1 %v940_v0 }
 0x132   :  { %735 = vmatpush3.bf16.msra.mxu1 %v798_v30 }
 0x133   :  { %736 = vmatprep.subr.bf16.mxu1 %v940_v0 }
 0x136   :  { %737 = vmatpush3.bf16.msra.mxu1 %v799_v31 }
 0x137   :  { %738 = vmatprep.subr.bf16.mxu1 %v940_v0 }
 0x13a   :  { %739 = vmatpush3.bf16.msra.mxu1 %v800_v32 }
 0x13b   :  { %740 = vmatprep.subr.bf16.mxu1 %v940_v0 }
 0x13e   :  { %741 = vmatpush3.bf16.msra.mxu1 %v801_v33 }
 0x13f   :  { %742 = vmatprep.subr.bf16.mxu1 %v940_v0 }
 0x142   :  { %743 = vmatpush3.bf16.msra.mxu1 %v802_v42 }
 0x143   :  { %744 = vmatprep.subr.bf16.mxu1 %v940_v0 }
 0x146   :  { %745 = vmatpush3.bf16.msra.mxu1 %v803_v43 }
 0x1fc   :  { %v239_v35 = vpop.f32.mrb[0].mxu1 }
 0x1fd   :  { %v240_v36 = vadd.f32 %v610_v34, %v239_v35  ;;  %v708_v37 = vpop.f32.mrb[1].mxu1 }
 0x1fe   :  { %v242_v38 = vpop.f32.mrb[2].mxu1 }
 0x1ff   :  { %v245_v39 = vmax.f32 %v240_v36, 0.0  ;;  %v709_v40 = vpop.f32.mrb[3].mxu1 }
 0x201   :  { %v246_v41 = vpack.c.bf16 %v245_v39, %v245_v39 }
 0x203   :  { %727 = vmatmul.mubr.bf16.vlgmr.msra.gmra.mrb[4].mxu0 %v246_v41 }
 0x204   :  { %766 = vmatprep.mubr.msk.bf16.mxu0 %vm941_vm0, %v940_v0  ;;  %751 = vmatpush3.bf16.msra.mxu0 %v804_v44 }
 0x205   :  { %752 = vmatprep.subr.bf16.mxu0 %v940_v0 }
 0x208   :  { %753 = vmatpush3.bf16.msra.mxu0 %v805_v45 }
 0x209   :  { %754 = vmatprep.subr.bf16.mxu0 %v940_v0 }
 0x20c   :  { %755 = vmatpush3.bf16.msra.mxu0 %v806_v46 }
 0x20d   :  { %756 = vmatprep.subr.bf16.mxu0 %v940_v0 }
 0x210   :  { %757 = vmatpush3.bf16.msra.mxu0 %v807_v47 }
 0x211   :  { %758 = vmatprep.subr.bf16.mxu0 %v940_v0 }
 0x214   :  { %759 = vmatpush3.bf16.msra.mxu0 %v808_v48 }
 0x215   :  { %760 = vmatprep.subr.bf16.mxu0 %v940_v0 }
 0x218   :  { %761 = vmatpush3.bf16.msra.mxu0 %v809_v49 }
 0x219   :  { %762 = vmatprep.subr.bf16.mxu0 %v940_v0 }
 0x21c   :  { %763 = vmatpush3.bf16.msra.mxu0 %v810_v58 }
 0x21d   :  { %764 = vmatprep.subr.bf16.mxu0 %v940_v0 }
 0x220   :  { %765 = vmatpush3.bf16.msra.mxu0 %v811_v59 }
 0x2d6   :  { %v351_v51 = vpop.f32.mrb[4].mxu0 }
 0x2d7   :  { %v352_v52 = vadd.f32 %v619_v50, %v351_v51  ;;  %v728_v53 = vpop.f32.mrb[5].mxu0 }
 0x2d8   :  { %v354_v54 = vpop.f32.mrb[6].mxu0 }
 0x2d9   :  { %v357_v55 = vmax.f32 %v352_v52, 0.0  ;;  %v729_v56 = vpop.f32.mrb[7].mxu0 }
 0x2db   :  { %v358_v57 = vpack.c.bf16 %v357_v55, %v357_v55 }
 0x2dd   :  { %747 = vmatmul.mubr.bf16.vlgmr.msra.gmra.mrb[4].mxu1 %v358_v57 }
 0x3b0   :  { %v463_v61 = vpop.f32.mrb[4].mxu1 }
 0x3b1   :  { %v464_v62 = vadd.f32 %v628_v60, %v463_v61  ;;  %v748_v63 = vpop.f32.mrb[5].mxu1 }
 0x3b2   :  { %v466_v1 = vpop.f32.mrb[6].mxu1 }
 0x3b3   :  { %v469_v2 = vmax.f32 %v464_v62, 0.0  ;;  %v749_v3 = vpop.f32.mrb[7].mxu1 }
 0x3b5   :  { %v470_v4 = vpack.c.bf16 %v469_v2, %v469_v2 }
 0x3b7   :  { %767 = vmatmul.mubr.bf16.vlgmr.msra.gmra.mrb[8].mxu0 %v470_v4 }
 0x48a   :  { %v574_v6 = vpop.f32.mrb[8].mxu0 }
 0x48b   :  { %v575_v0 = vadd.f32 %v637_v5, %v574_v6  ;;  %v768_v7 = vpop.f32.mrb[9].mxu0 }
 0x48c   :  { %v577_v8 = vpop.f32.mrb[10].mxu0 }
 0x48d   :  { %580 = vmax.xlane.f32.xlu0 %v575_v0  ;;  %v769_v9 = vpop.f32.mrb[11].mxu0 }
 0x51a   :  { %v581_v10 = vpop.xlane.xlu0 %580 }
 0x51b   :  { %v582_v11 = vsub.f32 %v575_v0, %v581_v10 }
 0x51d   :  { %v583_v12 = vmul.f32 1.442695, %v582_v11 }
 0x51f   :  { %812 = vpow2.f32 %v583_v12 }
 0x529   :  { %v813_v13 = vpop.eup %812 }
 0x52a   :  { %585 = vadd.xlane.f32.xlu0 %v813_v13 }
 0x5b7   :  { %v586_v14 = vpop.xlane.xlu0 %585 }
 0x5b8   :  { %814 = vrcp.f32 %v586_v14 }
 0x5c2   :  { %v815_v15 = vpop.eup %814 }
 0x5c3   :  { %v588_v16 = vmul.f32 %v815_v15, %v813_v13 }
 0x5c5   :  { %589 = vst [vmem:[#allocation10] sm:$0xff] %v588_v16 }
 0x5c6   :  { %915 = shalt.err (!%p912_p8)
}
 0x5c7   :  { %s916_s27 = scalar_lea.hbm %s1105_s5, 128 }
 0x5c8   :  { %p917_p9 = scmp.ne.s32.totalorder %s1105_s5, %s916_s27  ;;  %p920_p10 = scmp.lt.u32.totalorder %s916_s27, %s1105_s5 }
 0x5ca   :  { %p922_p11 = pnand %p920_p10, %p917_p9 }
 0x5cc   :  { %925 = shalt.err (!%p922_p11)
}
 0x5cd   :  { %599 = dma.vmem_to_hbm [thread:$0]  %s597_s24, 128, %s1105_s5, [#allocation4]  }
 0x5ce   :  { %932 = dma.done.wait [#allocation4], 128  }
 0x5cf   :  { %933 = vsyncadd [#allocation4], 4294967168 }
 0x5d0   :  { %603 = vsyncpa [#allocation3], 1 }
 0x5d1   :  { %604 = vsyncpa [#allocation6], 1 }
 0x5d2   :  { %605 = vsyncpa [#allocation9], 1 }
 0x5d3   :  { %606 = vsyncpa [#allocation4], 1 }

// kernel: tpu_custom_call.1
= control target key start
LH: loop header
LB: loop body
LE: loop exit
PB: predicated region body
PF: predicated region fallthrough
CT: control target
= control target key end

     0   :  { %10 = vsyncpa [#allocation3], 0  ;;  %s1100_s0 = inlined_call_operand.hbm [shape: f32[8,16], index: 0, kind: input, shape index: {}]   ;;  %s1101_s1 = inlined_call_operand.hbm [shape: bf16[16,128], index: 1, kind: input, shape index: {}]   ;;  %s1102_s2 = inlined_call_operand.hbm [shape: bf16[3,128,128], index: 2, kind: input, shape index: {}]   ;;  %s1103_s3 = inlined_call_operand.hbm [shape: bf16[128,128], index: 3, kind: input, shape index: {}]   ;;  %s1104_s4 = inlined_call_operand.vmem [shape: f32[8,128], index: 4, kind: input, shape index: {}]   ;;  %s1105_s5 = inlined_call_operand.hbm [shape: f32[8,128], index: 5, kind: output, shape index: {}]  }
   0x1   :  { %11 = vsyncpa [#allocation6], 0 }
   0x2   :  { %12 = vsyncpa [#allocation9], 0 }
   0x3   :  { %13 = vsyncpa [#allocation4], 0  ;;  %s934_s18 = smov [#allocation5]   ;;  %s816_s22 = scalar_lea.hbm %s1101_s1, 128 }
   0x4   :  { %s29_s19 = sshll.u32 %s934_s18, 4  ;;  %p817_p0 = scmp.ne.s32.totalorder %s1101_s1, %s816_s22  ;;  %s30_s19 = int_to_ptr.vmem [resolvable:$true] %s29_s19 }
   0x5   :  { %p820_p1 = scmp.lt.u32.totalorder %s816_s22, %s1101_s1 }
   0x7   :  { %p822_p2 = pnand %p820_p1, %p817_p0 }
   0x9   :  { %825 = shalt.err (!%p822_p2)
}
   0xa   :  { %s826_s27 = scalar_lea.vmem %s30_s19, 128  ;;  %p831_p4 = scmp.lt.s32.totalorder %s30_s19, %s30_s19 }
   0xb   :  { %p827_p3 = scmp.ne.s32.totalorder %s30_s19, %s826_s27  ;;  %p832_p5 = scmp.lt.s32.totalorder %s826_s27, %s826_s27 }
   0xd   :  { %p833_p6 = por %p832_p5, %p831_p4 }
   0xf   :  { %p834_p7 = pnand %p833_p6, %p827_p3 }
  0x11   :  { %837 = shalt.err (!%p834_p7)
}
  0x12   :  { %s935_s28 = smov 64   ;;  %s936_s29 = smov 4  }
  0x13   :  { %35 = dma.hbm_to_vmem [thread:$0]  %s1101_s1, 128, %s30_s19, [#allocation6], %s935_s28, %s935_s28, %s936_s29  }
  0x14   :  { %s937_s7 = smov [#allocation2]   ;;  %s938_s9 = smov [#allocation7]  }
  0x15   :  { %s20_s8 = sshll.u32 %s937_s7, 4  ;;  %s41_s10 = sshll.u32 %s938_s9, 4  ;;  %s21_s8 = int_to_ptr.vmem [resolvable:$true] %s20_s8  ;;  %s42_s10 = int_to_ptr.vmem [resolvable:$true] %s41_s10 }
  0x16   :  { %s838_s13 = scalar_lea.hbm %s1100_s0, 128 }
  0x17   :  { %p839_p8 = scmp.ne.s32.totalorder %s1100_s0, %s838_s13  ;;  %p842_p9 = scmp.lt.u32.totalorder %s838_s13, %s1100_s0 }
  0x19   :  { %p844_p10 = pnand %p842_p9, %p839_p8 }
  0x1b   :  { %847 = shalt.err (!%p844_p10)
}
  0x1c   :  { %s848_s1 = scalar_lea.vmem %s21_s8, 128  ;;  %p853_p12 = scmp.lt.s32.totalorder %s21_s8, %s21_s8 }
  0x1d   :  { %p849_p11 = scmp.ne.s32.totalorder %s21_s8, %s848_s1  ;;  %p854_p13 = scmp.lt.s32.totalorder %s848_s1, %s848_s1 }
  0x1f   :  { %p855_p0 = por %p854_p13, %p853_p12 }
  0x21   :  { %p856_p1 = pnand %p855_p0, %p849_p11 }
  0x23   :  { %859 = shalt.err (!%p856_p1)
}
  0x24   :  { %23 = dma.hbm_to_vmem [thread:$0]  %s1100_s0, 128, %s21_s8, [#allocation3]  }
  0x25   :  { %s860_s22 = scalar_lea.hbm %s1102_s2, 3072 }
  0x26   :  { %p861_p2 = scmp.ne.s32.totalorder %s1102_s2, %s860_s22  ;;  %p864_p3 = scmp.lt.u32.totalorder %s860_s22, %s1102_s2 }
  0x28   :  { %p866_p4 = pnand %p864_p3, %p861_p2 }
  0x2a   :  { %869 = shalt.err (!%p866_p4)
}
  0x2b   :  { %s870_s27 = scalar_lea.vmem %s42_s10, 3072  ;;  %p875_p6 = scmp.lt.s32.totalorder %s42_s10, %s42_s10 }
  0x2c   :  { %p871_p5 = scmp.ne.s32.totalorder %s42_s10, %s870_s27  ;;  %p876_p7 = scmp.lt.s32.totalorder %s870_s27, %s870_s27 }
  0x2e   :  { %p877_p8 = por %p876_p7, %p875_p6 }
  0x30   :  { %p878_p9 = pnand %p877_p8, %p871_p5 }
  0x32   :  { %881 = shalt.err (!%p878_p9)
}
  0x33   :  { %47 = dma.hbm_to_vmem [thread:$0]  %s1102_s2, 3072, %s42_s10, [#allocation6], %s935_s28, %s935_s28, %s936_s29  }
  0x34   :  { %s939_s6 = smov [#allocation8]   ;;  %s882_s11 = scalar_lea.hbm %s1103_s3, 1024 }
  0x35   :  { %s53_s7 = sshll.u32 %s939_s6, 4  ;;  %p883_p10 = scmp.ne.s32.totalorder %s1103_s3, %s882_s11  ;;  %s54_s7 = int_to_ptr.vmem [resolvable:$true] %s53_s7 }
  0x36   :  { %p886_p11 = scmp.lt.u32.totalorder %s882_s11, %s1103_s3 }
  0x38   :  { %p888_p12 = pnand %p886_p11, %p883_p10 }
  0x3a   :  { %891 = shalt.err (!%p888_p12)
}
  0x3b   :  { %s892_s16 = scalar_lea.vmem %s54_s7, 1024  ;;  %p897_p0 = scmp.lt.s32.totalorder %s54_s7, %s54_s7 }
  0x3c   :  { %p893_p13 = scmp.ne.s32.totalorder %s54_s7, %s892_s16  ;;  %p898_p1 = scmp.lt.s32.totalorder %s892_s16, %s892_s16 }
  0x3e   :  { %p899_p2 = por %p898_p1, %p897_p0 }
  0x40   :  { %p900_p3 = pnand %p899_p2, %p893_p13 }
  0x42   :  { %903 = shalt.err (!%p900_p3)
}
  0x43   :  { %59 = dma.hbm_to_vmem [thread:$0]  %s1103_s3, 1024, %s54_s7, [#allocation9], %s935_s28, %s935_s28, %s936_s29  }
  0x44   :  { %926 = dma.done.wait [#allocation3], 128  }
  0x45   :  { %927 = vsyncadd [#allocation3], 4294967168 }
  0x46   :  { %928 = dma.done.wait [#allocation6], 3200  }
  0x47   :  { %929 = vsyncadd [#allocation6], 4294964096 }
  0x48   :  { %930 = dma.done.wait [#allocation9], 1024  }
  0x49   :  { %931 = vsyncadd [#allocation9], 4294966272  ;;  %v940_v0 = vmov 0.0   ;;  %vm941_vm0 = vmmov 0   ;;  %v779_v1 = vld [vmem:[#allocation5] sm:$0xff]   ;;  %v75_v2 = vld [vmem:[#allocation2] sm:$0xff] }
  0x4a   :  { %684 = vmatprep.subr.bf16.mxu0 %v940_v0  ;;  %686 = vmatprep.mubr.msk.bf16.mxu0 %vm941_vm0, %v940_v0  ;;  %v76_v3 = vpack.c.bf16 %v75_v2, %v75_v2  ;;  %vm90_vm1 = vcmask 130048   ;;  %v780_v4 = vld [vmem:[#allocation7] sm:$0xff]   ;;  %v781_v5 = vld [vmem:[#allocation7 + $0x8] sm:$0xff]   ;;  %v782_v6 = vld [vmem:[#allocation7 + $0x10] sm:$0xff]   ;;  %s942_s23 = smov [#allocation10]  }
  0x4b   :  { %690 = vmatprep.subr.bf16.mxu1 %v940_v0  ;;  %706 = vmatprep.mubr.msk.bf16.mxu1 %vm941_vm0, %v940_v0  ;;  %v783_v7 = vld [vmem:[#allocation7 + $0x18] sm:$0xff]   ;;  %v784_v8 = vld [vmem:[#allocation7 + $0x20] sm:$0xff]   ;;  %v785_v9 = vld [vmem:[#allocation7 + $0x28] sm:$0xff]   ;;  %s596_s24 = sshll.u32 %s942_s23, 4  ;;  %s597_s24 = int_to_ptr.vmem [resolvable:$true] %s596_s24 }
  0x4c   :  { %685 = vmatpush3.bf16.msra.mxu0 %v779_v1  ;;  %691 = vmatpush3.bf16.msra.mxu1 %v780_v4  ;;  %v786_v10 = vld [vmem:[#allocation7 + $0x30] sm:$0xff]   ;;  %v787_v11 = vld [vmem:[#allocation7 + $0x38] sm:$0xff]   ;;  %v788_v12 = vld [vmem:[#allocation7 + $0x40] sm:$0xff]   ;;  %p909_p5 = scmp.lt.s32.totalorder %s597_s24, %s597_s24 }
  0x4d   :  { %710 = vmatprep.subr.bf16.mxu0 %v940_v0  ;;  %692 = vmatprep.subr.bf16.mxu1 %v940_v0  ;;  %v789_v13 = vld [vmem:[#allocation7 + $0x48] sm:$0xff]   ;;  %v790_v14 = vld [vmem:[#allocation7 + $0x50] sm:$0xff]   ;;  %v791_v15 = vld [vmem:[#allocation7 + $0x58] sm:$0xff]  }
  0x4e   :  { %v792_v16 = vld [vmem:[#allocation7 + $0x60] sm:$0xff]   ;;  %v793_v17 = vld [vmem:[#allocation7 + $0x68] sm:$0xff]   ;;  %v607_v18 = vld [vmem:[%s1104_s4] ss:$0 sm:$0xff] }
  0x4f   :  { %687 = vmatmul.mubr.msk.bf16.vlgmr.msra.gmra.mrb[0].mxu0 %vm90_vm1, %v76_v3  ;;  %v794_v26 = vld [vmem:[#allocation7 + $0x70] sm:$0xff]   ;;  %v795_v27 = vld [vmem:[#allocation7 + $0x78] sm:$0xff]   ;;  %v796_v28 = vld [vmem:[#allocation7 + $0x80] sm:$0xff]  }
  0x50   :  { %726 = vmatprep.mubr.msk.bf16.mxu0 %vm941_vm0, %v940_v0  ;;  %693 = vmatpush3.bf16.msra.mxu1 %v781_v5  ;;  %v797_v29 = vld [vmem:[#allocation7 + $0x88] sm:$0xff]   ;;  %v798_v30 = vld [vmem:[#allocation7 + $0x90] sm:$0xff]   ;;  %v799_v31 = vld [vmem:[#allocation7 + $0x98] sm:$0xff]  }
  0x51   :  { %694 = vmatprep.subr.bf16.mxu1 %v940_v0  ;;  %711 = vmatpush3.bf16.msra.mxu0 %v788_v12  ;;  %v800_v32 = vld [vmem:[#allocation7 + $0xa0] sm:$0xff]   ;;  %v801_v33 = vld [vmem:[#allocation7 + $0xa8] sm:$0xff]   ;;  %v610_v34 = vld [vmem:[%s1104_s4 + $0x1] ss:$0 sm:$0xff] }
  0x52   :  { %712 = vmatprep.subr.bf16.mxu0 %v940_v0  ;;  %v802_v42 = vld [vmem:[#allocation7 + $0xb0] sm:$0xff]   ;;  %v803_v43 = vld [vmem:[#allocation7 + $0xb8] sm:$0xff]   ;;  %v804_v44 = vld [vmem:[#allocation8] sm:$0xff]  }
  0x53   :  { %v805_v45 = vld [vmem:[#allocation8 + $0x8] sm:$0xff]   ;;  %v806_v46 = vld [vmem:[#allocation8 + $0x10] sm:$0xff]   ;;  %v807_v47 = vld [vmem:[#allocation8 + $0x18] sm:$0xff]  }
  0x54   :  { %695 = vmatpush3.bf16.msra.mxu1 %v782_v6  ;;  %v808_v48 = vld [vmem:[#allocation8 + $0x20] sm:$0xff]   ;;  %v809_v49 = vld [vmem:[#allocation8 + $0x28] sm:$0xff]   ;;  %v619_v50 = vld [vmem:[%s1104_s4 + $0x2] ss:$0 sm:$0xff] }
  0x55   :  { %696 = vmatprep.subr.bf16.mxu1 %v940_v0  ;;  %713 = vmatpush3.bf16.msra.mxu0 %v789_v13  ;;  %v810_v58 = vld [vmem:[#allocation8 + $0x30] sm:$0xff]   ;;  %v811_v59 = vld [vmem:[#allocation8 + $0x38] sm:$0xff]  }
  0x56   :  { %714 = vmatprep.subr.bf16.mxu0 %v940_v0  ;;  %v628_v60 = vld [vmem:[%s1104_s4 + $0x3] ss:$0 sm:$0xff]  ;;  %v637_v5 = vld [vmem:[%s1104_s4 + $0x4] ss:$0 sm:$0xff]  ;;  %s904_s4 = scalar_lea.vmem %s597_s24, 128 }
  0x57   :  { %p905_p4 = scmp.ne.s32.totalorder %s597_s24, %s904_s4  ;;  %p910_p6 = scmp.lt.s32.totalorder %s904_s4, %s904_s4 }
  0x58   :  { %697 = vmatpush3.bf16.msra.mxu1 %v783_v7 }
  0x59   :  { %698 = vmatprep.subr.bf16.mxu1 %v940_v0  ;;  %715 = vmatpush3.bf16.msra.mxu0 %v790_v14  ;;  %p911_p7 = por %p910_p6, %p909_p5 }
  0x5a   :  { %716 = vmatprep.subr.bf16.mxu0 %v940_v0 }
  0x5b   :  { %p912_p8 = pnand %p911_p7, %p905_p4 }
  0x5c   :  { %699 = vmatpush3.bf16.msra.mxu1 %v784_v8 }
  0x5d   :  { %700 = vmatprep.subr.bf16.mxu1 %v940_v0  ;;  %717 = vmatpush3.bf16.msra.mxu0 %v791_v15 }
  0x5e   :  { %718 = vmatprep.subr.bf16.mxu0 %v940_v0 }
  0x60   :  { %701 = vmatpush3.bf16.msra.mxu1 %v785_v9 }
  0x61   :  { %702 = vmatprep.subr.bf16.mxu1 %v940_v0  ;;  %719 = vmatpush3.bf16.msra.mxu0 %v792_v16 }
  0x62   :  { %720 = vmatprep.subr.bf16.mxu0 %v940_v0 }
  0x64   :  { %703 = vmatpush3.bf16.msra.mxu1 %v786_v10 }
  0x65   :  { %704 = vmatprep.subr.bf16.mxu1 %v940_v0  ;;  %721 = vmatpush3.bf16.msra.mxu0 %v793_v17 }
  0x66   :  { %722 = vmatprep.subr.bf16.mxu0 %v940_v0 }
  0x68   :  { %705 = vmatpush3.bf16.msra.mxu1 %v787_v11 }
  0x69   :  { %730 = vmatprep.subr.bf16.mxu1 %v940_v0  ;;  %723 = vmatpush3.bf16.msra.mxu0 %v794_v26 }
  0x6a   :  { %724 = vmatprep.subr.bf16.mxu0 %v940_v0 }
  0x6d   :  { %725 = vmatpush3.bf16.msra.mxu0 %v795_v27 }
  0x6e   :  { %750 = vmatprep.subr.bf16.mxu0 %v940_v0 }
 0x122   :  { %v128_v19 = vpop.f32.mrb[0].mxu0 }
 0x123   :  { %v129_v20 = vadd.f32 %v607_v18, %v128_v19  ;;  %v688_v21 = vpop.f32.mrb[1].mxu0 }
 0x124   :  { %v131_v22 = vpop.f32.mrb[2].mxu0 }
 0x125   :  { %v134_v23 = vmax.f32 %v129_v20, 0.0  ;;  %v689_v24 = vpop.f32.mrb[3].mxu0 }
 0x127   :  { %v135_v25 = vpack.c.bf16 %v134_v23, %v134_v23 }
 0x129   :  { %707 = vmatmul.mubr.bf16.vlgmr.msra.gmra.mrb[0].mxu1 %v135_v25 }
 0x12a   :  { %746 = vmatprep.mubr.msk.bf16.mxu1 %vm941_vm0, %v940_v0  ;;  %731 = vmatpush3.bf16.msra.mxu1 %v796_v28 }
 0x12b   :  { %732 = vmatprep.subr.bf16.mxu1 %v940_v0 }
 0x12e   :  { %733 = vmatpush3.bf16.msra.mxu1 %v797_v29 }
 0x12f   :  { %734 = vmatprep.subr.bf16.mxu1 %v940_v0 }
 0x132   :  { %735 = vmatpush3.bf16.msra.mxu1 %v798_v30 }
 0x133   :  { %736 = vmatprep.subr.bf16.mxu1 %v940_v0 }
 0x136   :  { %737 = vmatpush3.bf16.msra.mxu1 %v799_v31 }
 0x137   :  { %738 = vmatprep.subr.bf16.mxu1 %v940_v0 }
 0x13a   :  { %739 = vmatpush3.bf16.msra.mxu1 %v800_v32 }
 0x13b   :  { %740 = vmatprep.subr.bf16.mxu1 %v940_v0 }
 0x13e   :  { %741 = vmatpush3.bf16.msra.mxu1 %v801_v33 }
 0x13f   :  { %742 = vmatprep.subr.bf16.mxu1 %v940_v0 }
 0x142   :  { %743 = vmatpush3.bf16.msra.mxu1 %v802_v42 }
 0x143   :  { %744 = vmatprep.subr.bf16.mxu1 %v940_v0 }
 0x146   :  { %745 = vmatpush3.bf16.msra.mxu1 %v803_v43 }
 0x1fc   :  { %v239_v35 = vpop.f32.mrb[0].mxu1 }
 0x1fd   :  { %v240_v36 = vadd.f32 %v610_v34, %v239_v35  ;;  %v708_v37 = vpop.f32.mrb[1].mxu1 }
 0x1fe   :  { %v242_v38 = vpop.f32.mrb[2].mxu1 }
 0x1ff   :  { %v245_v39 = vmax.f32 %v240_v36, 0.0  ;;  %v709_v40 = vpop.f32.mrb[3].mxu1 }
 0x201   :  { %v246_v41 = vpack.c.bf16 %v245_v39, %v245_v39 }
 0x203   :  { %727 = vmatmul.mubr.bf16.vlgmr.msra.gmra.mrb[4].mxu0 %v246_v41 }
 0x204   :  { %766 = vmatprep.mubr.msk.bf16.mxu0 %vm941_vm0, %v940_v0  ;;  %751 = vmatpush3.bf16.msra.mxu0 %v804_v44 }
 0x205   :  { %752 = vmatprep.subr.bf16.mxu0 %v940_v0 }
 0x208   :  { %753 = vmatpush3.bf16.msra.mxu0 %v805_v45 }
 0x209   :  { %754 = vmatprep.subr.bf16.mxu0 %v940_v0 }
 0x20c   :  { %755 = vmatpush3.bf16.msra.mxu0 %v806_v46 }
 0x20d   :  { %756 = vmatprep.subr.bf16.mxu0 %v940_v0 }
 0x210   :  { %757 = vmatpush3.bf16.msra.mxu0 %v807_v47 }
 0x211   :  { %758 = vmatprep.subr.bf16.mxu0 %v940_v0 }
 0x214   :  { %759 = vmatpush3.bf16.msra.mxu0 %v808_v48 }
 0x215   :  { %760 = vmatprep.subr.bf16.mxu0 %v940_v0 }
 0x218   :  { %761 = vmatpush3.bf16.msra.mxu0 %v809_v49 }
 0x219   :  { %762 = vmatprep.subr.bf16.mxu0 %v940_v0 }
 0x21c   :  { %763 = vmatpush3.bf16.msra.mxu0 %v810_v58 }
 0x21d   :  { %764 = vmatprep.subr.bf16.mxu0 %v940_v0 }
 0x220   :  { %765 = vmatpush3.bf16.msra.mxu0 %v811_v59 }
 0x2d6   :  { %v351_v51 = vpop.f32.mrb[4].mxu0 }
 0x2d7   :  { %v352_v52 = vadd.f32 %v619_v50, %v351_v51  ;;  %v728_v53 = vpop.f32.mrb[5].mxu0 }
 0x2d8   :  { %v354_v54 = vpop.f32.mrb[6].mxu0 }
 0x2d9   :  { %v357_v55 = vmax.f32 %v352_v52, 0.0  ;;  %v729_v56 = vpop.f32.mrb[7].mxu0 }
 0x2db   :  { %v358_v57 = vpack.c.bf16 %v357_v55, %v357_v55 }
 0x2dd   :  { %747 = vmatmul.mubr.bf16.vlgmr.msra.gmra.mrb[4].mxu1 %v358_v57 }
 0x3b0   :  { %v463_v61 = vpop.f32.mrb[4].mxu1 }
 0x3b1   :  { %v464_v62 = vadd.f32 %v628_v60, %v463_v61  ;;  %v748_v63 = vpop.f32.mrb[5].mxu1 }
 0x3b2   :  { %v466_v1 = vpop.f32.mrb[6].mxu1 }
 0x3b3   :  { %v469_v2 = vmax.f32 %v464_v62, 0.0  ;;  %v749_v3 = vpop.f32.mrb[7].mxu1 }
 0x3b5   :  { %v470_v4 = vpack.c.bf16 %v469_v2, %v469_v2 }
 0x3b7   :  { %767 = vmatmul.mubr.bf16.vlgmr.msra.gmra.mrb[8].mxu0 %v470_v4 }
 0x48a   :  { %v574_v6 = vpop.f32.mrb[8].mxu0 }
 0x48b   :  { %v575_v0 = vadd.f32 %v637_v5, %v574_v6  ;;  %v768_v7 = vpop.f32.mrb[9].mxu0 }
 0x48c   :  { %v577_v8 = vpop.f32.mrb[10].mxu0 }
 0x48d   :  { %580 = vmax.xlane.f32.xlu0 %v575_v0  ;;  %v769_v9 = vpop.f32.mrb[11].mxu0 }
 0x51a   :  { %v581_v10 = vpop.xlane.xlu0 %580 }
 0x51b   :  { %v582_v11 = vsub.f32 %v575_v0, %v581_v10 }
 0x51d   :  { %v583_v12 = vmul.f32 1.442695, %v582_v11 }
 0x51f   :  { %812 = vpow2.f32 %v583_v12 }
 0x529   :  { %v813_v13 = vpop.eup %812 }
 0x52a   :  { %585 = vadd.xlane.f32.xlu0 %v813_v13 }
 0x5b7   :  { %v586_v14 = vpop.xlane.xlu0 %585 }
 0x5b8   :  { %814 = vrcp.f32 %v586_v14 }
 0x5c2   :  { %v815_v15 = vpop.eup %814 }
 0x5c3   :  { %v588_v16 = vmul.f32 %v815_v15, %v813_v13 }
 0x5c5   :  { %589 = vst [vmem:[#allocation10] sm:$0xff] %v588_v16 }
 0x5c6   :  { %915 = shalt.err (!%p912_p8)
}
 0x5c7   :  { %s916_s27 = scalar_lea.hbm %s1105_s5, 128 }
 0x5c8   :  { %p917_p9 = scmp.ne.s32.totalorder %s1105_s5, %s916_s27  ;;  %p920_p10 = scmp.lt.u32.totalorder %s916_s27, %s1105_s5 }
 0x5ca   :  { %p922_p11 = pnand %p920_p10, %p917_p9 }
 0x5cc   :  { %925 = shalt.err (!%p922_p11)
}
 0x5cd   :  { %599 = dma.vmem_to_hbm [thread:$0]  %s597_s24, 128, %s1105_s5, [#allocation4]  }
 0x5ce   :  { %932 = dma.done.wait [#allocation4], 128  }
 0x5cf   :  { %933 = vsyncadd [#allocation4], 4294967168 }
 0x5d0   :  { %603 = vsyncpa [#allocation3], 1 }
 0x5d1   :  { %604 = vsyncpa [#allocation6], 1 }
 0x5d2   :  { %605 = vsyncpa [#allocation9], 1 }
 0x5d3   :  { %606 = vsyncpa [#allocation4], 1 }

</bundles_post_ra>
